<compile_context>
chip_gen: v5e
topology: v5e:2x2
jax: 0.10.0
libtpu: 0.0.40
codegen_flags: <defaults>
</compile_context>

<pallas_src>
import math

import jax
import jax.numpy as jnp
from jax.experimental import pallas as pl
from jax.experimental.pallas import tpu as pltpu

LANE = 128      # vreg lane width (last dim)
SUBLANE = 8     # vreg sublane granularity (second-to-last dim)


def _round_up(x, m):
    return (x + m - 1) // m * m


def mlp_kernel(x_ref, w0_ref, w1_ref, w2_ref, w3_ref, o_ref):
    """One batch tile of the whole forward pass.

    Weights arrive pre-transposed ((in, out) layout) and zero-padded to
    lane-dense shapes, so every dot is a natural-layout MXU matmul and the
    output store is lane-dense (no masked partial stores).
    """
    h = x_ref[...]
    h = jnp.maximum(
        jnp.dot(h, w0_ref[...], preferred_element_type=jnp.float32), 0.0)
    h = jnp.maximum(
        jnp.dot(h, w1_ref[...], preferred_element_type=jnp.float32), 0.0)
    h = jnp.maximum(
        jnp.dot(h, w2_ref[...], preferred_element_type=jnp.float32), 0.0)
    # output layer: Linear only (no activation after the last layer)
    o_ref[...] = jnp.dot(h, w3_ref[...], preferred_element_type=jnp.float32)


def mlp_forward(x, weights, *, tile_b=512):
    """x: (B, D_in) float32; weights: list of 4 (out, in) float32 matrices
    in PyTorch nn.Linear convention."""
    B, d_in = x.shape
    num_classes = weights[-1].shape[0]

    # ---- wrapper-side layout fixes (done once, outside the kernel) ----------
    # Padded per-layer feature sizes: keep D_in as-is, pad every layer's output
    # (= next layer's input) up to a multiple of 128 lanes.
    padded_dims = [d_in] + [_round_up(w.shape[0], LANE) for w in weights]
    wts = []
    for l, w in enumerate(weights):
        out_f, in_f = w.shape
        wp = jnp.zeros((padded_dims[l], padded_dims[l + 1]), jnp.float32)
        wp = wp.at[:in_f, :out_f].set(w.T)          # (in, out), zero-padded
        wts.append(wp)
    out_pad = padded_dims[-1]

    # ---- batch tiling --------------------------------------------------------
    tile_b = min(tile_b, _round_up(B, SUBLANE))     # multiple of 8
    b_pad = _round_up(B, tile_b)
    if b_pad != B:
        x = jnp.pad(x, ((0, b_pad - B), (0, 0)))
    grid = (b_pad // tile_b,)

    # ---- advisory cost estimate (true, unpadded math) -----------------------
    sizes = [d_in] + [w.shape[0] for w in weights]
    flops = 2 * B * sum(sizes[i] * sizes[i + 1] for i in range(len(sizes) - 1))
    bytes_accessed = 4 * (x.size + sum(w.size for w in wts) + b_pad * out_pad)
    cost = pl.CostEstimate(flops=flops, transcendentals=0,
                           bytes_accessed=bytes_accessed)

    out = pl.pallas_call(
        mlp_kernel,
        out_shape=jax.ShapeDtypeStruct((b_pad, out_pad), jnp.float32),
        grid=grid,
        in_specs=[pl.BlockSpec((tile_b, d_in), lambda i: (i, 0))]
                + [pl.BlockSpec(wp.shape, lambda i: (0, 0)) for wp in wts],
        out_specs=pl.BlockSpec((tile_b, out_pad), lambda i: (i, 0)),
        compiler_params=pltpu.CompilerParams(
            dimension_semantics=("parallel",)),
        cost_estimate=cost,
    )(x, *wts)

    # Slice padded rows / lanes back to the logical result.
    return out[:B, :num_classes]


def kaiming_uniform(key, out_features, in_features):
    """Matches nn.init.kaiming_uniform_ defaults (a=0, fan_in, leaky_relu gain)."""
    gain = math.sqrt(2.0)
    bound = gain * math.sqrt(3.0 / in_features)
    return jax.random.uniform(
        key, (out_features, in_features), dtype=jnp.float32,
        minval=-bound, maxval=bound)


def make_mlp_params(key, input_shape, num_classes, hidden_sizes=(15, 15, 15)):
    layers_size = [input_shape, *hidden_sizes, num_classes]
    keys = jax.random.split(key, len(layers_size) - 1)
    weights = []
    for idx in range(len(layers_size) - 1):
        weights.append(
            kaiming_uniform(keys[idx], layers_size[idx + 1], layers_size[idx]))
    return weights


if __name__ == "__main__":
    key = jax.random.PRNGKey(0)
    k_x, k_w = jax.random.split(key)

    B = 8            # batch
    D_in = 16        # input_shape
    num_classes = 10
    hidden_sizes = (15, 15, 15)

    x = jax.random.normal(k_x, (B, D_in), dtype=jnp.float32)
    weights = make_mlp_params(k_w, D_in, num_classes, hidden_sizes)

    out = mlp_forward(x, weights)
    out = jax.block_until_ready(out)

    # pure-JAX reference of the same math (unpadded, PyTorch layout)
    h = x
    for w in weights[:-1]:
        h = jnp.maximum(h @ w.T, 0.0)
    ref = h @ weights[-1].T
    assert out.shape == (B, num_classes)
    assert jnp.allclose(out, ref, atol=1e-5, rtol=1e-5)

    print("KERNEL_OK")
</pallas_src>

<mosaic_0001>
module attributes {stable_mosaic.version = 11 : i64} {
  func.func @mlp_kernel(%arg0: i32, %arg1: memref<8x16xf32, #tpu.memory_space<vmem>>, %arg2: memref<16x128xf32, #tpu.memory_space<vmem>>, %arg3: memref<128x128xf32, #tpu.memory_space<vmem>>, %arg4: memref<128x128xf32, #tpu.memory_space<vmem>>, %arg5: memref<128x128xf32, #tpu.memory_space<vmem>>, %arg6: memref<8x128xf32, #tpu.memory_space<vmem>>) attributes {dimension_semantics = [#tpu.dimension_semantics<parallel>], iteration_bounds = array<i64: 1>, scalar_prefetch = 0 : i64, scratch_operands = 0 : i64, tpu.core_type = #tpu.core_type<tc>, window_params = [{transform_indices = @transform_0, window_bounds = array<i64: 8, 16>}, {pipeline_mode = #tpu.pipeline_mode<synchronous>, transform_indices = @transform_1, window_bounds = array<i64: 16, 128>}, {pipeline_mode = #tpu.pipeline_mode<synchronous>, transform_indices = @transform_2, window_bounds = array<i64: 128, 128>}, {pipeline_mode = #tpu.pipeline_mode<synchronous>, transform_indices = @transform_3, window_bounds = array<i64: 128, 128>}, {pipeline_mode = #tpu.pipeline_mode<synchronous>, transform_indices = @transform_4, window_bounds = array<i64: 128, 128>}, {transform_indices = @transform_5, window_bounds = array<i64: 8, 128>}]} {
    %c0 = arith.constant 0 : index
    %c0_0 = arith.constant 0 : index
    %0 = vector.load %arg1[%c0, %c0_0] : memref<8x16xf32, #tpu.memory_space<vmem>>, vector<8x16xf32>
    %c0_1 = arith.constant 0 : index
    %c0_2 = arith.constant 0 : index
    %1 = vector.load %arg2[%c0_1, %c0_2] : memref<16x128xf32, #tpu.memory_space<vmem>>, vector<16x128xf32>
    %cst = arith.constant dense<0.000000e+00> : vector<8x128xf32>
    %2 = tpu.matmul %0, %1, %cst {dimension_numbers = #tpu.dot_dimension_numbers<[1], [0], [0], [1], [0, 0, 1, 1], [], []>} : vector<8x16xf32>, vector<16x128xf32>, vector<8x128xf32> -> vector<8x128xf32>
    %cst_3 = arith.constant 0.000000e+00 : f32
    %3 = vector.broadcast %cst_3 : f32 to vector<8x128xf32>
    %4 = arith.maximumf %2, %3 : vector<8x128xf32>
    %c0_4 = arith.constant 0 : index
    %c0_5 = arith.constant 0 : index
    %5 = vector.load %arg3[%c0_4, %c0_5] : memref<128x128xf32, #tpu.memory_space<vmem>>, vector<128x128xf32>
    %cst_6 = arith.constant dense<0.000000e+00> : vector<8x128xf32>
    %6 = tpu.matmul %4, %5, %cst_6 {dimension_numbers = #tpu.dot_dimension_numbers<[1], [0], [0], [1], [0, 0, 1, 1], [], []>} : vector<8x128xf32>, vector<128x128xf32>, vector<8x128xf32> -> vector<8x128xf32>
    %cst_7 = arith.constant 0.000000e+00 : f32
    %7 = vector.broadcast %cst_7 : f32 to vector<8x128xf32>
    %8 = arith.maximumf %6, %7 : vector<8x128xf32>
    %c0_8 = arith.constant 0 : index
    %c0_9 = arith.constant 0 : index
    %9 = vector.load %arg4[%c0_8, %c0_9] : memref<128x128xf32, #tpu.memory_space<vmem>>, vector<128x128xf32>
    %cst_10 = arith.constant dense<0.000000e+00> : vector<8x128xf32>
    %10 = tpu.matmul %8, %9, %cst_10 {dimension_numbers = #tpu.dot_dimension_numbers<[1], [0], [0], [1], [0, 0, 1, 1], [], []>} : vector<8x128xf32>, vector<128x128xf32>, vector<8x128xf32> -> vector<8x128xf32>
    %cst_11 = arith.constant 0.000000e+00 : f32
    %11 = vector.broadcast %cst_11 : f32 to vector<8x128xf32>
    %12 = arith.maximumf %10, %11 : vector<8x128xf32>
    %c0_12 = arith.constant 0 : index
    %c0_13 = arith.constant 0 : index
    %13 = vector.load %arg5[%c0_12, %c0_13] : memref<128x128xf32, #tpu.memory_space<vmem>>, vector<128x128xf32>
    %cst_14 = arith.constant dense<0.000000e+00> : vector<8x128xf32>
    %14 = tpu.matmul %12, %13, %cst_14 {dimension_numbers = #tpu.dot_dimension_numbers<[1], [0], [0], [1], [0, 0, 1, 1], [], []>} : vector<8x128xf32>, vector<128x128xf32>, vector<8x128xf32> -> vector<8x128xf32>
    %c0_15 = arith.constant 0 : index
    %c0_16 = arith.constant 0 : index
    %15 = vector.load %arg6[%c0_15, %c0_16] : memref<8x128xf32, #tpu.memory_space<vmem>>, vector<8x128xf32>
    tpu.vector_store %arg6[%c0_15, %c0_16], %14 {strides = array<i32>} : memref<8x128xf32, #tpu.memory_space<vmem>>, vector<8x128xf32>,
    return
  }
  func.func @transform_0(%arg0: i32) -> (i32, i32) {
    %c0_i32 = arith.constant 0 : i32
    %c0_i32_0 = arith.constant 0 : i32
    return %arg0, %c0_i32 : i32, i32
  }
  func.func @transform_1(%arg0: i32) -> (i32, i32) {
    %c0_i32 = arith.constant 0 : i32
    %c0_i32_0 = arith.constant 0 : i32
    %c0_i32_1 = arith.constant 0 : i32
    return %c0_i32, %c0_i32_0 : i32, i32
  }
  func.func @transform_2(%arg0: i32) -> (i32, i32) {
    %c0_i32 = arith.constant 0 : i32
    %c0_i32_0 = arith.constant 0 : i32
    %c0_i32_1 = arith.constant 0 : i32
    return %c0_i32, %c0_i32_0 : i32, i32
  }
  func.func @transform_3(%arg0: i32) -> (i32, i32) {
    %c0_i32 = arith.constant 0 : i32
    %c0_i32_0 = arith.constant 0 : i32
    %c0_i32_1 = arith.constant 0 : i32
    return %c0_i32, %c0_i32_0 : i32, i32
  }
  func.func @transform_4(%arg0: i32) -> (i32, i32) {
    %c0_i32 = arith.constant 0 : i32
    %c0_i32_0 = arith.constant 0 : i32
    %c0_i32_1 = arith.constant 0 : i32
    return %c0_i32, %c0_i32_0 : i32, i32
  }
  func.func @transform_5(%arg0: i32) -> (i32, i32) {
    %c0_i32 = arith.constant 0 : i32
    %c0_i32_0 = arith.constant 0 : i32
    return %arg0, %c0_i32 : i32, i32
  }
}

</mosaic_0001>

<bundles_post_ra>
// kernel: tpu_custom_call.1
= control target key start
LH: loop header
LB: loop body
LE: loop exit
PB: predicated region body
PF: predicated region fallthrough
CT: control target
= control target key end

     0   :  { %10 = vsyncpa [#allocation3], 0  ;;  %s472_s0 = inlined_call_operand.hbm [shape: f32[8,16], index: 0, kind: input, shape index: {}]   ;;  %s473_s1 = inlined_call_operand.hbm [shape: f32[16,128], index: 1, kind: input, shape index: {}]   ;;  %s474_s2 = inlined_call_operand.hbm [shape: f32[128,128], index: 2, kind: input, shape index: {}]   ;;  %s475_s3 = inlined_call_operand.hbm [shape: f32[128,128], index: 3, kind: input, shape index: {}]   ;;  %s476_s4 = inlined_call_operand.hbm [shape: f32[128,128], index: 4, kind: input, shape index: {}]   ;;  %s477_s5 = inlined_call_operand.hbm [shape: f32[8,128], index: 5, kind: output, shape index: {}]  }
   0x1   :  { %11 = vsyncpa [#allocation6], 0 }
   0x2   :  { %12 = vsyncpa [#allocation9], 0  ;;  %s29_s20 = sshll.u32 %s473_s1, 4  ;;  %s30_s20 = int_to_ptr.hbm [resolvable:$true] %s29_s20 }
   0x3   :  { %13 = vsyncpa [#allocation4], 0  ;;  %s416_s21 = smov [#allocation5]   ;;  %s55_s25 = sshll.u32 %s475_s3, 4  ;;  %s56_s25 = int_to_ptr.hbm [resolvable:$true] %s55_s25 }
   0x4   :  { %s31_s22 = sshll.u32 %s416_s21, 4  ;;  %s417_s26 = smov 128   ;;  %s32_s22 = int_to_ptr.vmem [resolvable:$true] %s31_s22 }
   0x5   :  { %s418_s27 = smov 8   ;;  %s419_s28 = smov [#allocation8]  }
   0x6   :  { %37 = dma.hbm_to_vmem [thread:$0]  %s30_s20, 256, %s32_s22, [#allocation6], %s417_s26, %s417_s26, %s418_s27  }
   0x7   :  { %s57_s29 = sshll.u32 %s419_s28, 4  ;;  %s19_s7 = sshll.u32 %s472_s0, 4  ;;  %s58_s29 = int_to_ptr.vmem [resolvable:$true] %s57_s29  ;;  %s20_s7 = int_to_ptr.hbm [resolvable:$true] %s19_s7 }
   0x8   :  { %63 = dma.hbm_to_vmem [thread:$0]  %s56_s25, 2048, %s58_s29, [#allocation9], %s417_s26, %s417_s26, %s418_s27  }
   0x9   :  { %s42_s9 = sshll.u32 %s474_s2, 4  ;;  %s420_s10 = smov [#allocation2]   ;;  %s43_s9 = int_to_ptr.hbm [resolvable:$true] %s42_s9 }
   0xa   :  { %s21_s11 = sshll.u32 %s420_s10, 4  ;;  %s421_s3 = smov [#allocation7]   ;;  %s22_s11 = int_to_ptr.vmem [resolvable:$true] %s21_s11 }
   0xb   :  { %24 = dma.hbm_to_vmem [thread:$0]  %s20_s7, 128, %s22_s11, [#allocation3]  }
   0xc   :  { %s44_s12 = sshll.u32 %s421_s3, 4  ;;  %s68_s15 = sshll.u32 %s476_s4, 4  ;;  %s45_s12 = int_to_ptr.vmem [resolvable:$true] %s44_s12  ;;  %s69_s15 = int_to_ptr.hbm [resolvable:$true] %s68_s15 }
   0xd   :  { %50 = dma.hbm_to_vmem [thread:$0]  %s43_s9, 2048, %s45_s12, [#allocation6], %s417_s26, %s417_s26, %s418_s27  }
   0xe   :  { %s422_s0 = smov [#allocation10]  }
   0xf   :  { %s70_s16 = sshll.u32 %s422_s0, 4  ;;  %s71_s16 = int_to_ptr.vmem [resolvable:$true] %s70_s16 }
  0x10   :  { %76 = dma.hbm_to_vmem [thread:$0]  %s69_s15, 2048, %s71_s16, [#allocation9], %s417_s26, %s417_s26, %s418_s27  }
  0x11   :  { %408 = dma.done.wait [#allocation3], 128  }
  0x12   :  { %409 = vsyncadd [#allocation3], 4294967168 }
  0x13   :  { %410 = dma.done.wait [#allocation6], 2304  }
  0x14   :  { %411 = vsyncadd [#allocation6], 4294964992 }
  0x15   :  { %412 = dma.done.wait [#allocation9], 4096  }
  0x16   :  { %413 = vsyncadd [#allocation9], 4294963200  ;;  %v99_v0 = vld [vmem:[#allocation5 + $0x8] sm:$0xff]  ;;  %v98_v1 = vld [vmem:[#allocation5] sm:$0xff]  ;;  %vm100_vm0 = vcmask 130048   ;;  %s423_s2 = smov [#allocation11]  }
  0x17   :  { %118 = vmatpush.msra.mxu0 %v99_v0  ;;  %v97_v2 = vld [vmem:[#allocation2] sm:$0xff]  ;;  %v140_v3 = vld [vmem:[#allocation7 + $0x78] sm:$0xff]  ;;  %v139_v4 = vld [vmem:[#allocation7 + $0x70] sm:$0xff]  ;;  %s241_s4 = sshll.u32 %s423_s2, 4  ;;  %s243_s19 = sshll.u32 %s477_s5, 4  ;;  %s242_s4 = int_to_ptr.vmem [resolvable:$true] %s241_s4  ;;  %s244_s19 = int_to_ptr.hbm [resolvable:$true] %s243_s19 }
  0x18   :  { %141 = vmatpush.msra.mxu1 %v140_v3  ;;  %v138_v5 = vld [vmem:[#allocation7 + $0x68] sm:$0xff]  ;;  %v137_v6 = vld [vmem:[#allocation7 + $0x60] sm:$0xff]  ;;  %v136_v7 = vld [vmem:[#allocation7 + $0x58] sm:$0xff] }
  0x19   :  { %119 = vmatpush.msra.mxu0 %v98_v1  ;;  %v135_v8 = vld [vmem:[#allocation7 + $0x50] sm:$0xff]  ;;  %v134_v9 = vld [vmem:[#allocation7 + $0x48] sm:$0xff]  ;;  %v133_v10 = vld [vmem:[#allocation7 + $0x40] sm:$0xff] }
  0x1a   :  { %255 = vmatmul.msk.f32.vlgmr.msra.gmra.mxu0 %vm100_vm0, %v97_v2  ;;  %142 = vmatpush.msra.mxu1 %v139_v4  ;;  %v132_v11 = vld [vmem:[#allocation7 + $0x38] sm:$0xff]  ;;  %v131_v12 = vld [vmem:[#allocation7 + $0x30] sm:$0xff]  ;;  %v130_v13 = vld [vmem:[#allocation7 + $0x28] sm:$0xff] }
  0x1b   :  { %v129_v14 = vld [vmem:[#allocation7 + $0x20] sm:$0xff]  ;;  %v128_v15 = vld [vmem:[#allocation7 + $0x18] sm:$0xff]  ;;  %v127_v16 = vld [vmem:[#allocation7 + $0x10] sm:$0xff] }
  0x1c   :  { %143 = vmatpush.msra.mxu1 %v138_v5  ;;  %v126_v17 = vld [vmem:[#allocation7 + $0x8] sm:$0xff]  ;;  %v125_v18 = vld [vmem:[#allocation7] sm:$0xff]  ;;  %v177_v19 = vld [vmem:[#allocation8 + $0x78] sm:$0xff] }
  0x1d   :  { %v176_v20 = vld [vmem:[#allocation8 + $0x70] sm:$0xff]  ;;  %178 = vmatpush.msra.mxu2 %v177_v19  ;;  %v175_v21 = vld [vmem:[#allocation8 + $0x68] sm:$0xff]  ;;  %v174_v22 = vld [vmem:[#allocation8 + $0x60] sm:$0xff] }
  0x1e   :  { %144 = vmatpush.msra.mxu1 %v137_v6  ;;  %v173_v23 = vld [vmem:[#allocation8 + $0x58] sm:$0xff]  ;;  %v172_v24 = vld [vmem:[#allocation8 + $0x50] sm:$0xff]  ;;  %v171_v25 = vld [vmem:[#allocation8 + $0x48] sm:$0xff] }
  0x1f   :  { %179 = vmatpush.msra.mxu2 %v176_v20  ;;  %v170_v26 = vld [vmem:[#allocation8 + $0x40] sm:$0xff]  ;;  %v169_v27 = vld [vmem:[#allocation8 + $0x38] sm:$0xff]  ;;  %v168_v28 = vld [vmem:[#allocation8 + $0x30] sm:$0xff] }
  0x20   :  { %145 = vmatpush.msra.mxu1 %v136_v7  ;;  %v167_v29 = vld [vmem:[#allocation8 + $0x28] sm:$0xff]  ;;  %v166_v30 = vld [vmem:[#allocation8 + $0x20] sm:$0xff]  ;;  %v165_v31 = vld [vmem:[#allocation8 + $0x18] sm:$0xff] }
  0x21   :  { %180 = vmatpush.msra.mxu2 %v175_v21  ;;  %v164_v32 = vld [vmem:[#allocation8 + $0x10] sm:$0xff]  ;;  %v163_v35 = vld [vmem:[#allocation8 + $0x8] sm:$0xff]  ;;  %v162_v36 = vld [vmem:[#allocation8] sm:$0xff] }
  0x22   :  { %146 = vmatpush.msra.mxu1 %v135_v8  ;;  %v214_v37 = vld [vmem:[#allocation10 + $0x78] sm:$0xff]  ;;  %v213_v38 = vld [vmem:[#allocation10 + $0x70] sm:$0xff]  ;;  %v212_v39 = vld [vmem:[#allocation10 + $0x68] sm:$0xff] }
  0x23   :  { %181 = vmatpush.msra.mxu2 %v174_v22  ;;  %215 = vmatpush.msra.mxu3 %v214_v37  ;;  %v211_v40 = vld [vmem:[#allocation10 + $0x60] sm:$0xff]  ;;  %v210_v41 = vld [vmem:[#allocation10 + $0x58] sm:$0xff]  ;;  %v209_v42 = vld [vmem:[#allocation10 + $0x50] sm:$0xff] }
  0x24   :  { %147 = vmatpush.msra.mxu1 %v134_v9  ;;  %v208_v43 = vld [vmem:[#allocation10 + $0x48] sm:$0xff]  ;;  %v207_v44 = vld [vmem:[#allocation10 + $0x40] sm:$0xff]  ;;  %v206_v45 = vld [vmem:[#allocation10 + $0x38] sm:$0xff] }
  0x25   :  { %182 = vmatpush.msra.mxu2 %v173_v23  ;;  %216 = vmatpush.msra.mxu3 %v213_v38  ;;  %v205_v46 = vld [vmem:[#allocation10 + $0x30] sm:$0xff]  ;;  %v204_v47 = vld [vmem:[#allocation10 + $0x28] sm:$0xff]  ;;  %v203_v48 = vld [vmem:[#allocation10 + $0x20] sm:$0xff] }
  0x26   :  { %148 = vmatpush.msra.mxu1 %v133_v10  ;;  %v202_v49 = vld [vmem:[#allocation10 + $0x18] sm:$0xff]  ;;  %v201_v50 = vld [vmem:[#allocation10 + $0x10] sm:$0xff]  ;;  %v200_v53 = vld [vmem:[#allocation10 + $0x8] sm:$0xff] }
  0x27   :  { %183 = vmatpush.msra.mxu2 %v172_v24  ;;  %217 = vmatpush.msra.mxu3 %v212_v39  ;;  %v199_v54 = vld [vmem:[#allocation10] sm:$0xff] }
  0x28   :  { %149 = vmatpush.msra.mxu1 %v132_v11 }
  0x29   :  { %184 = vmatpush.msra.mxu2 %v171_v25  ;;  %218 = vmatpush.msra.mxu3 %v211_v40 }
  0x2a   :  { %150 = vmatpush.msra.mxu1 %v131_v12 }
  0x2b   :  { %185 = vmatpush.msra.mxu2 %v170_v26  ;;  %219 = vmatpush.msra.mxu3 %v210_v41 }
  0x2c   :  { %151 = vmatpush.msra.mxu1 %v130_v13 }
  0x2d   :  { %186 = vmatpush.msra.mxu2 %v169_v27  ;;  %220 = vmatpush.msra.mxu3 %v209_v42 }
  0x2e   :  { %152 = vmatpush.msra.mxu1 %v129_v14 }
  0x2f   :  { %187 = vmatpush.msra.mxu2 %v168_v28  ;;  %221 = vmatpush.msra.mxu3 %v208_v43 }
  0x30   :  { %153 = vmatpush.msra.mxu1 %v128_v15 }
  0x31   :  { %188 = vmatpush.msra.mxu2 %v167_v29  ;;  %222 = vmatpush.msra.mxu3 %v207_v44 }
  0x32   :  { %154 = vmatpush.msra.mxu1 %v127_v16 }
  0x33   :  { %189 = vmatpush.msra.mxu2 %v166_v30  ;;  %223 = vmatpush.msra.mxu3 %v206_v45 }
  0x34   :  { %155 = vmatpush.msra.mxu1 %v126_v17 }
  0x35   :  { %190 = vmatpush.msra.mxu2 %v165_v31  ;;  %224 = vmatpush.msra.mxu3 %v205_v46 }
  0x36   :  { %156 = vmatpush.msra.mxu1 %v125_v18 }
  0x37   :  { %191 = vmatpush.msra.mxu2 %v164_v32  ;;  %225 = vmatpush.msra.mxu3 %v204_v47 }
  0x39   :  { %192 = vmatpush.msra.mxu2 %v163_v35  ;;  %226 = vmatpush.msra.mxu3 %v203_v48 }
  0x3b   :  { %193 = vmatpush.msra.mxu2 %v162_v36  ;;  %227 = vmatpush.msra.mxu3 %v202_v49 }
  0x3d   :  { %228 = vmatpush.msra.mxu3 %v201_v50 }
  0x3f   :  { %229 = vmatpush.msra.mxu3 %v200_v53 }
  0x41   :  { %230 = vmatpush.msra.mxu3 %v199_v54 }
  0x97   :  { %v121_v33 = vpop.f32.mrf.mxu0 }
  0x98   :  { %v124_v34 = vmax.f32 %v121_v33, 0.0 }
  0x9a   :  { %157 = vmatmul.f32.vlgmr.msra.gmra.mxu1 %v124_v34 }
 0x117   :  { %v158_v51 = vpop.f32.mrf.mxu1 }
 0x118   :  { %v161_v52 = vmax.f32 %v158_v51, 0.0 }
 0x11a   :  { %194 = vmatmul.f32.vlgmr.msra.gmra.mxu2 %v161_v52 }
 0x19d   :  { %v195_v55 = vpop.f32.mrf.mxu2 }
 0x19e   :  { %v198_v56 = vmax.f32 %v195_v55, 0.0 }
 0x1a0   :  { %231 = vmatmul.f32.vlgmr.msra.gmra.mxu3 %v198_v56 }
 0x223   :  { %v232_v57 = vpop.f32.mrf.mxu3 }
 0x224   :  { %235 = vst [vmem:[#allocation11] sm:$0xff] %v232_v57 }
 0x225   :  { %246 = dma.vmem_to_hbm [thread:$0]  %s242_s4, 128, %s244_s19, [#allocation4]  }
 0x226   :  { %414 = dma.done.wait [#allocation4], 128  }
 0x227   :  { %415 = vsyncadd [#allocation4], 4294967168 }
 0x228   :  { %251 = vsyncpa [#allocation3], 1 }
 0x229   :  { %252 = vsyncpa [#allocation6], 1 }
 0x22a   :  { %253 = vsyncpa [#allocation9], 1 }
 0x22b   :  { %254 = vsyncpa [#allocation4], 1 }

</bundles_post_ra>
